<compile_context>
chip_gen: v7x
topology: tpu7x:2x2x1
jax: 0.10.0
libtpu: 0.0.40
codegen_flags: <defaults>
</compile_context>

<pallas_src>
import functools
import math

import jax
import jax.numpy as jnp
from jax.experimental import pallas as pl
from jax.experimental.pallas import tpu as pltpu

_LANE = 128
_SUBLANE = 8


def _round_up(a, b):
    return ((a + b - 1) // b) * b


def _default_vmem_limit_bytes():
    """~3/4 of physical VMEM: v5e/v6e (128 MiB) -> 96 MiB, v7x (64 MiB) -> 48 MiB."""
    phys = 64 * 1024 * 1024  # conservative fallback (v7x-sized)
    try:
        info = pltpu.get_tpu_info()
        phys = int(getattr(info, "vmem_capacity_bytes", phys)) or phys
    except Exception:
        pass
    return min((phys * 3) // 4, 100 * 1024 * 1024)


def _gauss_zero_kernel(params_ref, d2_ref, out_ref, d2rep_ref, *, g_sigma, g_mu):
    """out[gs*g_mu + gm, l] = coef[gs] * exp(nhiv[gs] * d2[gm, l])."""
    d2 = d2_ref[...]                                      # [g_mu, tile_L]
    # Replicate d2 across the collapsed (gs, gm) sublane axis with static
    # sub-slice stores; the scratch is fully overwritten every grid step.
    for gs in range(g_sigma):
        d2rep_ref[gs * g_mu:(gs + 1) * g_mu, :] = d2
    coef = params_ref[:, 0:1]                             # [G*G, 1]
    nhiv = params_ref[:, 1:2]                             # [G*G, 1]
    # Full-width (G*G, tile_L) VPU mul + EUP exp + dense store.
    out_ref[...] = (coef * jnp.exp(nhiv * d2rep_ref[...])).astype(out_ref.dtype)


def gauss_zero(x, mu, sigma, *, vmem_limit_bytes=None):
    """Gaussian.forward(x, diff_order=0) for dim == 1.

    x:     [T, S, 1] float32   (time, sample, dim)
    mu:    [G, T, 1] float32   (gauss, time, dim)
    sigma: [G, 1]    float32   (gauss, dim)
    returns [G, G, T, S] float32
      (axis 0 from sigma's gauss axis, axis 1 from mu's gauss axis — the exact
       broadcast the PyTorch code produces since self.sigma stays 4-D.)
    """
    T, S, D = x.shape
    G = mu.shape[0]
    assert D == 1, "reference PyTorch only executes for dim == 1"
    assert mu.shape == (G, T, 1) and sigma.shape == (G, 1)

    GG = G * G
    L = T * S

    if vmem_limit_bytes is None:
        vmem_limit_bytes = _default_vmem_limit_bytes()

    # ---- wrapper-side fusion: d2 = (x - mu)^2 flattened to [G, T*S] ---------
    d2 = (x[:, :, 0][None, :, :] - mu[:, :, 0][:, :, None]) ** 2      # [G, T, S]
    d2 = d2.reshape(G, L).astype(jnp.float32)

    # ---- per-sigma scalars, expanded to the collapsed G*G axis --------------
    sig = sigma.astype(jnp.float32)                                   # [G, 1]
    coef = 1.0 / (sig * jnp.sqrt(jnp.float32(2.0 * math.pi)))         # [G, 1]
    nhiv = -0.5 / (sig * sig)                                         # [G, 1]
    params = jnp.concatenate(
        [jnp.repeat(coef, G, axis=0), jnp.repeat(nhiv, G, axis=0)], axis=1
    )                                                                 # [G*G, 2]

    # ---- padding- and double-buffer-aware lane tiling ------------------------
    GG_pad = _round_up(GG, _SUBLANE)
    G_pad = _round_up(G, _SUBLANE)
    # f32 VMEM bytes consumed per lane of tile_L:
    #   out block (GG_pad rows, x2 buffers) + d2 block (G_pad rows, x2 buffers)
    #   + single-buffered replication scratch (GG_pad rows).
    bytes_per_lane = 4 * (2 * GG_pad + 2 * G_pad + GG_pad)
    budget = max(vmem_limit_bytes - (4 << 20), bytes_per_lane * _LANE)
    cap = max(_LANE, (budget // bytes_per_lane) // _LANE * _LANE)

    L128 = _round_up(L, _LANE)
    if L128 >= 2 * _LANE:
        # Keep >= 2 grid steps so the "parallel" axis can shard across the
        # two TensorCores on v7x.
        tile_L = min(cap, _round_up(L128 // 2, _LANE))
    else:
        tile_L = _LANE
    L_pad = _round_up(L128, tile_L)
    grid = (L_pad // tile_L,)

    if L_pad != L:
        d2 = jnp.pad(d2, ((0, 0), (0, L_pad - L)))

    out = pl.pallas_call(
        functools.partial(_gauss_zero_kernel, g_sigma=G, g_mu=G),
        out_shape=jax.ShapeDtypeStruct((GG, L_pad), jnp.float32),
        grid_spec=pltpu.PrefetchScalarGridSpec(
            num_scalar_prefetch=0,
            grid=grid,
            in_specs=[
                pl.BlockSpec((GG, 2), lambda i: (0, 0)),      # coef/nhiv (tiny, resident)
                pl.BlockSpec((G, tile_L), lambda i: (0, i)),  # d2 lane tile
            ],
            out_specs=pl.BlockSpec((GG, tile_L), lambda i: (0, i)),
            scratch_shapes=[pltpu.VMEM((GG, tile_L), jnp.float32)],
        ),
        compiler_params=pltpu.CompilerParams(
            dimension_semantics=("parallel",),
            vmem_limit_bytes=int(vmem_limit_bytes),
        ),
    )(params, d2)

    if L_pad != L:
        out = out[:, :L]
    return out.reshape(G, G, T, S)


def ref_forward(x, mu, sigma):
    """Pure-JAX transcription of the PyTorch module (diff_order=0)."""
    mu4 = mu[:, :, None, :]                     # mu.unsqueeze(2)        [G,T,1,D]
    sig4 = sigma[:, None, None, :]              # sigma.unsqueeze(1,1)   [G,1,1,D]
    func = 1.0
    for d in range(x.shape[2]):
        a = x[None, :, :, d] - mu4[:, :, :, d]  # [G, T, S]
        func = func * (1.0 / (sig4 * jnp.sqrt(jnp.float32(2.0 * math.pi)))) \
            * jnp.exp(-0.5 * (a ** 2) / (sig4 ** 2))
    return func                                 # broadcasts to [G, G, T, S]


# TODO(synk): forward(diff_order=1|2) (gaussFirst / gaussSecond) assign a 4-D
# broadcast RHS into a 3-D tensor slice and raise a shape error in the
# reference PyTorch for every input configuration, so there is no concrete
# semantics to reproduce; only the diff_order=0 path is implemented.


if __name__ == "__main__":
    key = jax.random.PRNGKey(0)
    G, T, S, D = 4, 8, 16, 1                    # gauss, time, sample, dim
    k_mu, k_sig, k_x = jax.random.split(key, 3)

    mu = jax.random.normal(k_mu, (G, T, D), dtype=jnp.float32)
    sigma = 0.5 + jax.random.uniform(k_sig, (G, D), dtype=jnp.float32)  # > 0
    x = jax.random.normal(k_x, (T, S, D), dtype=jnp.float32)

    out = jax.block_until_ready(gauss_zero(x, mu, sigma))
    ref = ref_forward(x, mu, sigma)
    assert out.shape == (G, G, T, S), out.shape
    assert out.dtype == jnp.float32
    assert jnp.allclose(out, ref, rtol=1e-5, atol=1e-6), \
        float(jnp.max(jnp.abs(out - ref)))

    # Second config: T*S = 384 (not a multiple of 128) exercises the lane
    # padding path and a >= 2-step grid (tile_L=256, L padded to 512).
    T2, S2 = 16, 24
    k2m, k2s, k2x = jax.random.split(jax.random.PRNGKey(1), 3)
    mu2 = jax.random.normal(k2m, (G, T2, D), dtype=jnp.float32)
    sigma2 = 0.5 + jax.random.uniform(k2s, (G, D), dtype=jnp.float32)
    x2 = jax.random.normal(k2x, (T2, S2, D), dtype=jnp.float32)

    out2 = jax.block_until_ready(gauss_zero(x2, mu2, sigma2))
    ref2 = ref_forward(x2, mu2, sigma2)
    assert out2.shape == (G, G, T2, S2), out2.shape
    assert jnp.allclose(out2, ref2, rtol=1e-5, atol=1e-6), \
        float(jnp.max(jnp.abs(out2 - ref2)))

    print("KERNEL_OK")
</pallas_src>

<mosaic_0001>
module attributes {stable_mosaic.version = 11 : i64} {
  func.func @_gauss_zero_kernel(%arg0: i32, %arg1: memref<16x2xf32, #tpu.memory_space<vmem>>, %arg2: memref<4x128xf32, #tpu.memory_space<vmem>>, %arg3: memref<16x128xf32, #tpu.memory_space<vmem>>, %arg4: memref<16x128xf32, #tpu.memory_space<vmem>>) attributes {dimension_semantics = [#tpu.dimension_semantics<parallel>], iteration_bounds = array<i64: 1>, scalar_prefetch = 0 : i64, scratch_operands = 1 : i64, tpu.core_type = #tpu.core_type<tc>, window_params = [{pipeline_mode = #tpu.pipeline_mode<synchronous>, transform_indices = @transform_0, window_bounds = array<i64: 16, 2>}, {transform_indices = @transform_1, window_bounds = array<i64: 4, 128>}, {transform_indices = @transform_2, window_bounds = array<i64: 16, 128>}]} {
    %c0 = arith.constant 0 : index
    %c0_0 = arith.constant 0 : index
    %0 = vector.load %arg2[%c0, %c0_0] : memref<4x128xf32, #tpu.memory_space<vmem>>, vector<4x128xf32>
    %c0_1 = arith.constant 0 : index
    %c0_2 = arith.constant 0 : index
    %1 = vector.load %arg4[%c0_1, %c0_2] : memref<16x128xf32, #tpu.memory_space<vmem>>, vector<4x128xf32>
    tpu.vector_store %arg4[%c0_1, %c0_2], %0 {strides = array<i32>} : memref<16x128xf32, #tpu.memory_space<vmem>>, vector<4x128xf32>,
    %c4 = arith.constant 4 : index
    %c0_3 = arith.constant 0 : index
    %2 = vector.load %arg4[%c4, %c0_3] : memref<16x128xf32, #tpu.memory_space<vmem>>, vector<4x128xf32>
    tpu.vector_store %arg4[%c4, %c0_3], %0 {strides = array<i32>} : memref<16x128xf32, #tpu.memory_space<vmem>>, vector<4x128xf32>,
    %c8 = arith.constant 8 : index
    %c0_4 = arith.constant 0 : index
    %3 = vector.load %arg4[%c8, %c0_4] : memref<16x128xf32, #tpu.memory_space<vmem>>, vector<4x128xf32>
    tpu.vector_store %arg4[%c8, %c0_4], %0 {strides = array<i32>} : memref<16x128xf32, #tpu.memory_space<vmem>>, vector<4x128xf32>,
    %c12 = arith.constant 12 : index
    %c0_5 = arith.constant 0 : index
    %4 = vector.load %arg4[%c12, %c0_5] : memref<16x128xf32, #tpu.memory_space<vmem>>, vector<4x128xf32>
    tpu.vector_store %arg4[%c12, %c0_5], %0 {strides = array<i32>} : memref<16x128xf32, #tpu.memory_space<vmem>>, vector<4x128xf32>,
    %c0_6 = arith.constant 0 : index
    %c0_7 = arith.constant 0 : index
    %5 = vector.load %arg1[%c0_6, %c0_7] : memref<16x2xf32, #tpu.memory_space<vmem>>, vector<16x1xf32>
    %c0_8 = arith.constant 0 : index
    %c1 = arith.constant 1 : index
    %6 = vector.load %arg1[%c0_8, %c1] : memref<16x2xf32, #tpu.memory_space<vmem>>, vector<16x1xf32>
    %c0_9 = arith.constant 0 : index
    %c0_10 = arith.constant 0 : index
    %7 = vector.load %arg4[%c0_9, %c0_10] : memref<16x128xf32, #tpu.memory_space<vmem>>, vector<16x128xf32>
    %8 = vector.broadcast %6 : vector<16x1xf32> to vector<16x128xf32>
    %9 = arith.mulf %8, %7 : vector<16x128xf32>
    %10 = math.exp %9 : vector<16x128xf32>
    %11 = vector.broadcast %5 : vector<16x1xf32> to vector<16x128xf32>
    %12 = arith.mulf %11, %10 : vector<16x128xf32>
    %c0_11 = arith.constant 0 : index
    %c0_12 = arith.constant 0 : index
    %13 = vector.load %arg3[%c0_11, %c0_12] : memref<16x128xf32, #tpu.memory_space<vmem>>, vector<16x128xf32>
    tpu.vector_store %arg3[%c0_11, %c0_12], %12 {strides = array<i32>} : memref<16x128xf32, #tpu.memory_space<vmem>>, vector<16x128xf32>,
    return
  }
  func.func @transform_0(%arg0: i32) -> (i32, i32) {
    %c0_i32 = arith.constant 0 : i32
    %c0_i32_0 = arith.constant 0 : i32
    %c0_i32_1 = arith.constant 0 : i32
    return %c0_i32, %c0_i32_0 : i32, i32
  }
  func.func @transform_1(%arg0: i32) -> (i32, i32) {
    %c0_i32 = arith.constant 0 : i32
    %c0_i32_0 = arith.constant 0 : i32
    return %c0_i32, %arg0 : i32, i32
  }
  func.func @transform_2(%arg0: i32) -> (i32, i32) {
    %c0_i32 = arith.constant 0 : i32
    %c0_i32_0 = arith.constant 0 : i32
    return %c0_i32, %arg0 : i32, i32
  }
}

</mosaic_0001>

<bundles_post_ra>
// kernel: tpu_custom_call.1
= control target key start
LH: loop header
LB: loop body
LE: loop exit
PB: predicated region body
PF: predicated region fallthrough
CT: control target
= control target key end

     0   :  { %v101_v2 = vmov 1   ;;  %v102_v3 = vmov 0   ;;  %s142_s0 = inlined_call_operand.vmem [shape: f32[16,2], index: 0, kind: input, shape index: {}]   ;;  %s143_s1 = inlined_call_operand.vmem [shape: f32[4,128], index: 1, kind: input, shape index: {}]   ;;  %s144_s2 = inlined_call_operand.hbm [shape: f32[16,128], index: 2, kind: output, shape index: {}]  }
   0x1   :  { %v17_v0 = vld [vmem:[%s142_s0] sm:$0xff]  ;;  %70 = vset.pattern.permute.xlu0 %v101_v2  ;;  %71 = vset.pattern.permute.xlu1 %v102_v3 }
   0x2   :  { %v12_v1 = vld [vmem:[%s143_s1] sm:$0xf] }
   0x3   :  { %13 = vst [vmem:[#allocation2] sm:$0xf] %v12_v1  ;;  %14 = vst [vmem:[#allocation2 + $0x4] sm:$0xf] %v12_v1 }
   0x4   :  { %15 = vst [vmem:[#allocation2 + $0x8] sm:$0xf] %v12_v1  ;;  %16 = vst [vmem:[#allocation2 + $0xc] sm:$0xf] %v12_v1 }
   0x5   :  { %7 = vsyncpa [#allocation4], 0  ;;  %23 = vperm.xlu0 %70, %v17_v0   ;;  %38 = vperm.xlu1 %71, %v17_v0   ;;  %v18_v4 = vld [vmem:[%s142_s0 + $0x8] sm:$0xff]  ;;  %s103_s1 = smov [#allocation3]  }
   0x6   :  { %s54_s15 = sshll.u32 %s103_s1, 4  ;;  %s55_s15 = int_to_ptr.vmem [resolvable:$true] %s54_s15 }
   0x7   :  { %s77_s0 = scalar_lea.vmem %s55_s15, 256  ;;  %p82_p1 = scmp.lt.s32.totalorder %s55_s15, %s55_s15 }
   0x8   :  { %p78_p0 = scmp.ne.s32.totalorder %s55_s15, %s77_s0  ;;  %p83_p2 = scmp.lt.s32.totalorder %s77_s0, %s77_s0 }
   0x9   :  { %28 = vperm.xlu0 %70, %v18_v4   ;;  %42 = vperm.xlu1 %71, %v18_v4  }
   0xa   :  { %v19_v5 = vld [vmem:[#allocation2] sm:$0xff]  ;;  %p84_p3 = por %p83_p2, %p82_p1 }
   0xb   :  { %v20_v8 = vld [vmem:[#allocation2 + $0x8] sm:$0xff] }
   0xc   :  { %p85_p4 = pnand %p84_p3, %p78_p0 }
   0xd   :  { %72 = vset.pattern.permute.xlu0 %v102_v3 }
  0x84   :  { %v24_v6 = vpop.permute.xlu0 %23  ;;  %v39_v13 = vpop.permute.xlu1 %38 }
  0x85   :  { %v31_v7 = vmul.f32 %v24_v6, %v19_v5 }
  0x87   :  { %v33_v9 = vmul.f32 1.442695, %v31_v7 }
  0x88   :  { %v29_v10 = vpop.permute.xlu0 %28  ;;  %v43_v17 = vpop.permute.xlu1 %42 }
  0x89   :  { %73 = vpow2.f32 %v33_v9  ;;  %v32_v11 = vmul.f32 %v29_v10, %v20_v8 }
  0x8b   :  { %v35_v12 = vmul.f32 1.442695, %v32_v11 }
  0x8d   :  { %75 = vpow2.f32 %v35_v12 }
  0x93   :  { %v74_v14 = vpop.eup %73 }
  0x94   :  { %v45_v15 = vmul.f32 %v74_v14, %v39_v13 }
  0x96   :  { %47 = vst [vmem:[#allocation3] sm:$0xff] %v45_v15 }
  0x97   :  { %v76_v16 = vpop.eup %75 }
  0x98   :  { %v46_v18 = vmul.f32 %v76_v16, %v43_v17 }
  0x9a   :  { %48 = vst [vmem:[#allocation3 + $0x8] sm:$0xff] %v46_v18 }
  0x9b   :  { %88 = shalt.err (!%p85_p4)
}
  0x9c   :  { %s89_s18 = scalar_lea.hbm %s144_s2, 256 }
  0x9d   :  { %p90_p5 = scmp.ne.s32.totalorder %s144_s2, %s89_s18  ;;  %p93_p6 = scmp.lt.u32.totalorder %s89_s18, %s144_s2 }
  0x9f   :  { %p95_p7 = pnand %p93_p6, %p90_p5 }
  0xa1   :  { %98 = shalt.err (!%p95_p7)
}
  0xa2   :  { %s104_s23 = smov 128   ;;  %s105_s24 = smov 8  }
  0xa3   :  { %60 = dma.vmem_to_hbm [thread:$0]  %s55_s15, 256, %s144_s2, [#allocation4], %s104_s23, %s104_s23, %s105_s24  }
  0xa4   :  { %99 = dma.done.wait [#allocation4], 256  }
  0xa5   :  { %100 = vsyncadd [#allocation4], 4294967040 }
  0xa6   :  { %64 = vsyncpa [#allocation4], 1 }

</bundles_post_ra>
